<compile_context>
chip_gen: v7x
topology: tpu7x:2x2x1
jax: 0.10.0
libtpu: 0.0.40
codegen_flags: <defaults>
</compile_context>

<pallas_src>
import jax
import jax.numpy as jnp
from jax.experimental import pallas as pl
from jax.experimental.pallas import tpu as pltpu


def _round_up(n: int, m: int) -> int:
    return ((n + m - 1) // m) * m


def linear_kernel(x_ref, w_ref, b_ref, o_ref):
    # x_ref: (TB, 784), w_ref: (784, 10), b_ref: (1, 10), o_ref: (TB, 10)
    acc = jnp.dot(x_ref[...], w_ref[...], preferred_element_type=jnp.float32)
    o_ref[...] = (acc + b_ref[...]).astype(o_ref.dtype)


def mnist_logistic_regression(x, w_t, b, *, tb=512):
    """y = x @ w_t + b, matching torch.nn.Linear(784, 10).

    x:   (B, 784) float32
    w_t: (784, 10) float32  (transpose of PyTorch's (10, 784) weight)
    b:   (10,)     float32
    tb:  batch-tile size (rows per grid step); clamped to a multiple of 8.
    returns (B, 10) float32
    """
    B, D_in = x.shape
    D_out = w_t.shape[1]
    b2d = b.reshape(1, D_out)

    # Tile size: multiple of 8 (sublane), no larger than the padded batch.
    tb = max(8, min(int(tb), _round_up(B, 8)))
    tb = _round_up(tb, 8)
    B_pad = _round_up(B, tb)
    if B_pad != B:
        x = jnp.pad(x, ((0, B_pad - B), (0, 0)))

    grid = (B_pad // tb,)

    cost = pl.CostEstimate(
        flops=2 * B_pad * D_in * D_out,
        bytes_accessed=(B_pad * D_in * 4) + (D_in * D_out * 4)
        + (B_pad * D_out * 4) + (D_out * 4),
        transcendentals=0,
    )

    out = pl.pallas_call(
        linear_kernel,
        out_shape=jax.ShapeDtypeStruct((B_pad, D_out), x.dtype),
        grid_spec=pltpu.PrefetchScalarGridSpec(
            num_scalar_prefetch=0,
            grid=grid,
            in_specs=[
                # x: streamed per batch tile.
                pl.BlockSpec((tb, D_in), lambda i: (i, 0)),
                # W_t, b: constant index map -> VMEM-resident across steps.
                pl.BlockSpec((D_in, D_out), lambda i: (0, 0)),
                pl.BlockSpec((1, D_out), lambda i: (0, 0)),
            ],
            out_specs=pl.BlockSpec((tb, D_out), lambda i: (i, 0)),
        ),
        compiler_params=pltpu.CompilerParams(
            # Batch tiles are independent -> parallel (lets v7x use both TCs).
            dimension_semantics=("parallel",),
            vmem_limit_bytes=32 * 1024 * 1024,
        ),
        cost_estimate=cost,
    )(x, w_t, b2d)

    return out[:B]


if __name__ == "__main__":
    key = jax.random.PRNGKey(0)
    k_x, k_w, k_b = jax.random.split(key, 3)

    # Small but non-trivial: B=200 with tb=128 exercises multi-step tiling
    # plus the ragged-tail (pad to 256) path.
    B, D_in, D_out = 200, 784, 10

    # Deterministic parameter init mirroring nn.Linear's default:
    # U(-1/sqrt(fan_in), 1/sqrt(fan_in)).
    bound = 1.0 / jnp.sqrt(jnp.float32(D_in))
    w = jax.random.uniform(k_w, (D_out, D_in), jnp.float32, -bound, bound)
    b = jax.random.uniform(k_b, (D_out,), jnp.float32, -bound, bound)

    x = jax.random.normal(k_x, (B, D_in), jnp.float32)

    y = mnist_logistic_regression(x, w.T, b, tb=128)
    y = jax.block_until_ready(y)

    # Cross-check against plain-JAX reference of the PyTorch forward.
    y_ref = x @ w.T + b
    assert y.shape == (B, D_out)
    assert jnp.allclose(y, y_ref, atol=1e-4, rtol=1e-4)

    print("KERNEL_OK")
</pallas_src>

<mosaic_0001>
module attributes {stable_mosaic.version = 11 : i64} {
  func.func @linear_kernel(%arg0: i32, %arg1: memref<128x784xf32, #tpu.memory_space<vmem>>, %arg2: memref<784x10xf32, #tpu.memory_space<vmem>>, %arg3: memref<1x10xf32, #tpu.memory_space<vmem>>, %arg4: memref<128x10xf32, #tpu.memory_space<vmem>>) attributes {dimension_semantics = [#tpu.dimension_semantics<parallel>], iteration_bounds = array<i64: 2>, scalar_prefetch = 0 : i64, scratch_operands = 0 : i64, tpu.core_type = #tpu.core_type<tc>, window_params = [{transform_indices = @transform_0, window_bounds = array<i64: 128, 784>}, {pipeline_mode = #tpu.pipeline_mode<synchronous>, transform_indices = @transform_1, window_bounds = array<i64: 784, 10>}, {pipeline_mode = #tpu.pipeline_mode<synchronous>, transform_indices = @transform_2, window_bounds = array<i64: 1, 10>}, {transform_indices = @transform_3, window_bounds = array<i64: 128, 10>}]} {
    %c0 = arith.constant 0 : index
    %c0_0 = arith.constant 0 : index
    %0 = vector.load %arg1[%c0, %c0_0] : memref<128x784xf32, #tpu.memory_space<vmem>>, vector<128x784xf32>
    %c0_1 = arith.constant 0 : index
    %c0_2 = arith.constant 0 : index
    %1 = vector.load %arg2[%c0_1, %c0_2] : memref<784x10xf32, #tpu.memory_space<vmem>>, vector<784x10xf32>
    %cst = arith.constant dense<0.000000e+00> : vector<128x10xf32>
    %2 = tpu.matmul %0, %1, %cst {dimension_numbers = #tpu.dot_dimension_numbers<[1], [0], [0], [1], [0, 0, 1, 1], [], []>} : vector<128x784xf32>, vector<784x10xf32>, vector<128x10xf32> -> vector<128x10xf32>
    %c0_3 = arith.constant 0 : index
    %c0_4 = arith.constant 0 : index
    %3 = vector.load %arg3[%c0_3, %c0_4] : memref<1x10xf32, #tpu.memory_space<vmem>>, vector<1x10xf32>
    %4 = vector.broadcast %3 : vector<1x10xf32> to vector<128x10xf32>
    %5 = arith.addf %2, %4 : vector<128x10xf32>
    %c0_5 = arith.constant 0 : index
    %c0_6 = arith.constant 0 : index
    %6 = vector.load %arg4[%c0_5, %c0_6] : memref<128x10xf32, #tpu.memory_space<vmem>>, vector<128x10xf32>
    tpu.vector_store %arg4[%c0_5, %c0_6], %5 {strides = array<i32>} : memref<128x10xf32, #tpu.memory_space<vmem>>, vector<128x10xf32>,
    return
  }
  func.func @transform_0(%arg0: i32) -> (i32, i32) {
    %c0_i32 = arith.constant 0 : i32
    %c0_i32_0 = arith.constant 0 : i32
    return %arg0, %c0_i32 : i32, i32
  }
  func.func @transform_1(%arg0: i32) -> (i32, i32) {
    %c0_i32 = arith.constant 0 : i32
    %c0_i32_0 = arith.constant 0 : i32
    %c0_i32_1 = arith.constant 0 : i32
    return %c0_i32, %c0_i32_0 : i32, i32
  }
  func.func @transform_2(%arg0: i32) -> (i32, i32) {
    %c0_i32 = arith.constant 0 : i32
    %c0_i32_0 = arith.constant 0 : i32
    %c0_i32_1 = arith.constant 0 : i32
    return %c0_i32, %c0_i32_0 : i32, i32
  }
  func.func @transform_3(%arg0: i32) -> (i32, i32) {
    %c0_i32 = arith.constant 0 : i32
    %c0_i32_0 = arith.constant 0 : i32
    return %arg0, %c0_i32 : i32, i32
  }
}

</mosaic_0001>

<bundles_post_ra>
// kernel: tpu_custom_call.1
= control target key start
LH: loop header
LB: loop body
LE: loop exit
PB: predicated region body
PF: predicated region fallthrough
CT: control target
= control target key end

     0   :  { %s1563_s12 = smov 0   ;;  %s2121_s0 = inlined_call_operand.vmem [shape: f32[256,784], index: 0, kind: input, shape index: {}]   ;;  %s2122_s1 = inlined_call_operand.vmem [shape: f32[784,10], index: 1, kind: input, shape index: {}]   ;;  %s2123_s2 = inlined_call_operand.vmem [shape: f32[1,10], index: 2, kind: input, shape index: {}]   ;;  %s2124_s3 = inlined_call_operand.vmem [shape: f32[256,10], index: 3, kind: output, shape index: {}]  }
   0x1 LB: > { %s1096_s13 = sadd.s32 4294967295, %s1541_s12   ;;  %p1100_p0 = scmp.ge.s32.totalorder %s1541_s12, 1  ;;  %s1541_s12 = sphi %s1563_s12, %s13_s12  }
   0x2   : > { %p139_p1 = scmp.lt.s32.totalorder %s1541_s12, 3 }
   0x4   : > { %p140_p2 = pnand %p1100_p0, %p139_p1 }
   0x5   : > { %v305_v0 = vld [vmem:[%s2122_s1 + $0x80] sm:$0xff] (!%p140_p2)  ;;  %v306_v1 = vld [vmem:[%s2122_s1 + $0x88] sm:$0xff] (!%p140_p2)  ;;  %v307_v11 = vld [vmem:[%s2122_s1 + $0x90] sm:$0xff] (!%p140_p2)  ;;  %s1607_s11 = sshll.u32 (!%p140_p2), %s1096_s13, 4  ;;  %vm394_vm0 = vcmask (!%p140_p2), 130048   ;;  %vm1023_vm1 = vcmask (!%p140_p2), 80896  }
   0x6   : > { %143 = sbr.rel (%p140_p2) target bundleno = 369 (0x171), region = 32  ;;  %v337_v2 = vld [vmem:[%s2122_s1 + $0x180] sm:$0xff] (!%p140_p2)  ;;  %v1410_v3 = vpack.c.bf16 (!%p140_p2), %v306_v1, %v305_v0  ;;  %v338_v4 = vld [vmem:[%s2122_s1 + $0x188] sm:$0xff] (!%p140_p2)  ;;  %v308_v13 = vld [vmem:[%s2122_s1 + $0x98] sm:$0xff] (!%p140_p2)  ;;  %p165_p3 = scmp.lt.s32.totalorder (!%p140_p2), %s1607_s11, 31 }
   0x7   : > { %v289_v5 = vld [vmem:[%s2122_s1] sm:$0xff] (!%p140_p2)  ;;  %v290_v6 = vld [vmem:[%s2122_s1 + $0x8] sm:$0xff] (!%p140_p2)  ;;  %v1442_v7 = vpack.c.bf16 (!%p140_p2), %v338_v4, %v337_v2  ;;  %v339_v14 = vld [vmem:[%s2122_s1 + $0x190] sm:$0xff] (!%p140_p2)  ;;  %v1414_v16 = vpack.c.bf16 (!%p140_p2), %v308_v13, %v307_v11 }
   0x8   : > { %v1412_v8 = vpack.c.bf16 (!%p140_p2), %v290_v6, %v289_v5  ;;  %v321_v9 = vld [vmem:[%s2122_s1 + $0x100] sm:$0xff] (!%p140_p2)  ;;  %v322_v10 = vld [vmem:[%s2122_s1 + $0x108] sm:$0xff] (!%p140_p2)  ;;  %1411 = vmatprep.subr.bf16.mxu0 (!%p140_p2), %v1410_v3  ;;  %v340_v15 = vld [vmem:[%s2122_s1 + $0x198] sm:$0xff] (!%p140_p2) }
   0x9   : > { %v1444_v12 = vpack.c.bf16 (!%p140_p2), %v322_v10, %v321_v9  ;;  %1443 = vmatprep.subr.bf16.mxu1 (!%p140_p2), %v1442_v7  ;;  %v1446_v17 = vpack.c.bf16 (!%p140_p2), %v340_v15, %v339_v14  ;;  %v291_v18 = vld [vmem:[%s2122_s1 + $0x10] sm:$0xff] (!%p140_p2)  ;;  %v292_v19 = vld [vmem:[%s2122_s1 + $0x18] sm:$0xff] (!%p140_p2)  ;;  %v309_v23 = vld [vmem:[%s2122_s1 + $0xa0] sm:$0xff] (!%p140_p2) }
   0xa   : > { %1413 = vmatpush3.bf16.msra.mxu0 (!%p140_p2), %v1412_v8  ;;  %v323_v20 = vld [vmem:[%s2122_s1 + $0x110] sm:$0xff] (!%p140_p2)  ;;  %v1416_v21 = vpack.c.bf16 (!%p140_p2), %v292_v19, %v291_v18  ;;  %v324_v22 = vld [vmem:[%s2122_s1 + $0x118] sm:$0xff] (!%p140_p2)  ;;  %v310_v24 = vld [vmem:[%s2122_s1 + $0xa8] sm:$0xff] (!%p140_p2) }
   0xb   : > { %1445 = vmatpush3.bf16.msra.mxu1 (!%p140_p2), %v1444_v12  ;;  %1415 = vmatprep.subr.bf16.mxu0 (!%p140_p2), %v1414_v16  ;;  %v1448_v25 = vpack.c.bf16 (!%p140_p2), %v324_v22, %v323_v20  ;;  %v1418_v26 = vpack.c.bf16 (!%p140_p2), %v310_v24, %v309_v23  ;;  %v341_v27 = vld [vmem:[%s2122_s1 + $0x1a0] sm:$0xff] (!%p140_p2)  ;;  %v342_v28 = vld [vmem:[%s2122_s1 + $0x1a8] sm:$0xff] (!%p140_p2)  ;;  %v311_v35 = vld [vmem:[%s2122_s1 + $0xb0] sm:$0xff] (!%p140_p2) }
   0xc   : > { %1447 = vmatprep.subr.bf16.mxu1 (!%p140_p2), %v1446_v17  ;;  %v293_v29 = vld [vmem:[%s2122_s1 + $0x20] sm:$0xff] (!%p140_p2)  ;;  %v1450_v30 = vpack.c.bf16 (!%p140_p2), %v342_v28, %v341_v27  ;;  %v294_v31 = vld [vmem:[%s2122_s1 + $0x28] sm:$0xff] (!%p140_p2)  ;;  %v312_v36 = vld [vmem:[%s2122_s1 + $0xb8] sm:$0xff] (!%p140_p2) }
   0xd   : > { %v325_v32 = vld [vmem:[%s2122_s1 + $0x120] sm:$0xff]  ;;  %v326_v33 = vld [vmem:[%s2122_s1 + $0x128] sm:$0xff]  ;;  %v1420_v34 = vpack.c.bf16 %v294_v31, %v293_v29  ;;  %v343_v37 = vld [vmem:[%s2122_s1 + $0x1b0] sm:$0xff]  ;;  %v1422_v39 = vpack.c.bf16 %v312_v36, %v311_v35  ;;  %s2126_s11 = smov (!%p165_p3, %s1607_s11), 31 }
   0xe   : > { %1417 = vmatpush3.bf16.msra.mxu0 %v1416_v21  ;;  %v1452_v38 = vpack.c.bf16 %v326_v33, %v325_v32  ;;  %v344_v40 = vld [vmem:[%s2122_s1 + $0x1b8] sm:$0xff]  ;;  %v295_v41 = vld [vmem:[%s2122_s1 + $0x30] sm:$0xff]  ;;  %v313_v46 = vld [vmem:[%s2122_s1 + $0xc0] sm:$0xff]  ;;  %s1526_s23 = smul.u32 56, %s2126_s11 }
   0xf   : > { %1449 = vmatpush3.bf16.msra.mxu1 %v1448_v25  ;;  %1419 = vmatprep.subr.bf16.mxu0 %v1418_v26  ;;  %v296_v42 = vld [vmem:[%s2122_s1 + $0x38] sm:$0xff]  ;;  %v1454_v43 = vpack.c.bf16 %v344_v40, %v343_v37  ;;  %v327_v44 = vld [vmem:[%s2122_s1 + $0x130] sm:$0xff]  ;;  %v314_v47 = vld [vmem:[%s2122_s1 + $0xc8] sm:$0xff] }
  0x10   : > { %1451 = vmatprep.subr.bf16.mxu1 %v1450_v30  ;;  %v328_v45 = vld [vmem:[%s2122_s1 + $0x138] sm:$0xff]  ;;  %v345_v48 = vld [vmem:[%s2122_s1 + $0x1c0] sm:$0xff]  ;;  %v346_v49 = vld [vmem:[%s2122_s1 + $0x1c8] sm:$0xff]  ;;  %v1424_v50 = vpack.c.bf16 %v296_v42, %v295_v41  ;;  %v1426_v52 = vpack.c.bf16 %v314_v47, %v313_v46  ;;  %s1733_s18 = scalar_lea.vmem %s2121_s0, %s1526_s23 }
  0x11   : > { %v1456_v51 = vpack.c.bf16 %v328_v45, %v327_v44  ;;  %v297_v53 = vld [vmem:[%s2122_s1 + $0x40] sm:$0xff]  ;;  %v298_v54 = vld [vmem:[%s2122_s1 + $0x48] sm:$0xff]  ;;  %v1458_v56 = vpack.c.bf16 %v346_v49, %v345_v48  ;;  %v315_v58 = vld [vmem:[%s2122_s1 + $0xd0] sm:$0xff] }
  0x12   : > { %1421 = vmatpush3.bf16.msra.mxu0 %v1420_v34  ;;  %v329_v55 = vld [vmem:[%s2122_s1 + $0x140] sm:$0xff]  ;;  %v330_v57 = vld [vmem:[%s2122_s1 + $0x148] sm:$0xff]  ;;  %v316_v59 = vld [vmem:[%s2122_s1 + $0xd8] sm:$0xff]  ;;  %v1428_v62 = vpack.c.bf16 %v298_v54, %v297_v53 }
  0x13   : > { %1453 = vmatpush3.bf16.msra.mxu1 %v1452_v38  ;;  %1423 = vmatprep.subr.bf16.mxu0 %v1422_v39  ;;  %v347_v60 = vld [vmem:[%s2122_s1 + $0x1d0] sm:$0xff]  ;;  %v348_v61 = vld [vmem:[%s2122_s1 + $0x1d8] sm:$0xff]  ;;  %v1460_v63 = vpack.c.bf16 %v330_v57, %v329_v55  ;;  %v1430_v0 = vpack.c.bf16 %v316_v59, %v315_v58  ;;  %v317_v6 = vld [vmem:[%s2122_s1 + $0xe0] sm:$0xff] }
  0x14   : > { %1455 = vmatprep.subr.bf16.mxu1 %v1454_v43  ;;  %v299_v1 = vld [vmem:[%s2122_s1 + $0x50] sm:$0xff]  ;;  %v300_v2 = vld [vmem:[%s2122_s1 + $0x58] sm:$0xff]  ;;  %v1462_v4 = vpack.c.bf16 %v348_v61, %v347_v60  ;;  %v318_v7 = vld [vmem:[%s2122_s1 + $0xe8] sm:$0xff] }
  0x15   : > { %v331_v3 = vld [vmem:[%s2122_s1 + $0x150] sm:$0xff]  ;;  %v332_v5 = vld [vmem:[%s2122_s1 + $0x158] sm:$0xff]  ;;  %v349_v8 = vld [vmem:[%s2122_s1 + $0x1e0] sm:$0xff]  ;;  %v1432_v10 = vpack.c.bf16 %v300_v2, %v299_v1  ;;  %v1434_v14 = vpack.c.bf16 %v318_v7, %v317_v6 }
  0x16   : > { %1425 = vmatpush3.bf16.msra.mxu0 %v1424_v50  ;;  %v350_v9 = vld [vmem:[%s2122_s1 + $0x1e8] sm:$0xff]  ;;  %v301_v11 = vld [vmem:[%s2122_s1 + $0x60] sm:$0xff]  ;;  %v1464_v13 = vpack.c.bf16 %v332_v5, %v331_v3  ;;  %v180_v17 = vld [vmem:[%s1733_s18 + $0x18] sm:$0xff] }
  0x17   : > { %1457 = vmatpush3.bf16.msra.mxu1 %v1456_v51  ;;  %1427 = vmatprep.subr.bf16.mxu0 %v1426_v52  ;;  %v302_v12 = vld [vmem:[%s2122_s1 + $0x68] sm:$0xff]  ;;  %v333_v15 = vld [vmem:[%s2122_s1 + $0x160] sm:$0xff]  ;;  %v1466_v18 = vpack.c.bf16 %v350_v9, %v349_v8  ;;  %v319_v20 = vld [vmem:[%s2122_s1 + $0xf0] sm:$0xff] }
  0x18   : > { %1459 = vmatprep.subr.bf16.mxu1 %v1458_v56  ;;  %v178_v16 = vld [vmem:[%s1733_s18 + $0x8] sm:$0xff]  ;;  %v320_v21 = vld [vmem:[%s2122_s1 + $0xf8] sm:$0xff]  ;;  %v351_v22 = vld [vmem:[%s2122_s1 + $0x1f0] sm:$0xff]  ;;  %652 = vmatprep.mubr.f32.mxu1 %v180_v17  ;;  %v1436_v24 = vpack.c.bf16 %v302_v12, %v301_v11 }
  0x19   : > { %v334_v19 = vld [vmem:[%s2122_s1 + $0x168] sm:$0xff]  ;;  %507 = vmatprep.mubr.f32.mxu0 %v178_v16  ;;  %v352_v23 = vld [vmem:[%s2122_s1 + $0x1f8] sm:$0xff]  ;;  %v1438_v26 = vpack.c.bf16 %v320_v21, %v319_v20  ;;  %v303_v27 = vld [vmem:[%s2122_s1 + $0x70] sm:$0xff] }
  0x1a   : > { %1429 = vmatpush3.bf16.msra.mxu0 %v1428_v62  ;;  %v1468_v25 = vpack.c.bf16 %v334_v19, %v333_v15  ;;  %v304_v28 = vld [vmem:[%s2122_s1 + $0x78] sm:$0xff]  ;;  %v335_v29 = vld [vmem:[%s2122_s1 + $0x170] sm:$0xff]  ;;  %v1470_v30 = vpack.c.bf16 %v352_v23, %v351_v22  ;;  %v369_v32 = vld [vmem:[%s2122_s1 + $0x280] sm:$0xff] }
  0x1b   : > { %1461 = vmatpush3.bf16.msra.mxu1 %v1460_v63  ;;  %1431 = vmatprep.subr.bf16.mxu0 %v1430_v0  ;;  %v336_v31 = vld [vmem:[%s2122_s1 + $0x178] sm:$0xff]  ;;  %v370_v33 = vld [vmem:[%s2122_s1 + $0x288] sm:$0xff]  ;;  %v1440_v34 = vpack.c.bf16 %v304_v28, %v303_v27  ;;  %v353_v37 = vld [vmem:[%s2122_s1 + $0x200] sm:$0xff] }
  0x1c   : > { %1463 = vmatprep.subr.bf16.mxu1 %v1462_v4  ;;  %v1472_v35 = vpack.c.bf16 %v336_v31, %v335_v29  ;;  %v1474_v36 = vpack.c.bf16 %v370_v33, %v369_v32  ;;  %v354_v38 = vld [vmem:[%s2122_s1 + $0x208] sm:$0xff]  ;;  %v371_v39 = vld [vmem:[%s2122_s1 + $0x290] sm:$0xff]  ;;  %v372_v40 = vld [vmem:[%s2122_s1 + $0x298] sm:$0xff] }
  0x1d   : > { %v177_v41 = vld [vmem:[%s1733_s18] sm:$0xff]  ;;  %v1476_v42 = vpack.c.bf16 %v354_v38, %v353_v37  ;;  %v179_v43 = vld [vmem:[%s1733_s18 + $0x10] sm:$0xff]  ;;  %v1478_v46 = vpack.c.bf16 %v372_v40, %v371_v39  ;;  %v356_v48 = vld [vmem:[%s2122_s1 + $0x218] sm:$0xff] }
  0x1e   : > { %1433 = vmatpush3.bf16.msra.mxu0 %v1432_v10  ;;  %v185_v44 = vld [vmem:[%s1733_s18 + $0x40] sm:$0xff]  ;;  %v187_v45 = vld [vmem:[%s1733_s18 + $0x50] sm:$0xff]  ;;  %v374_v50 = vld [vmem:[%s2122_s1 + $0x2a8] sm:$0xff] }
  0x1f   : > { %1465 = vmatpush3.bf16.msra.mxu1 %v1464_v13  ;;  %1435 = vmatprep.subr.bf16.mxu0 %v1434_v14  ;;  %v355_v47 = vld [vmem:[%s2122_s1 + $0x210] sm:$0xff]  ;;  %v373_v49 = vld [vmem:[%s2122_s1 + $0x2a0] sm:$0xff]  ;;  %v184_v51 = vld [vmem:[%s1733_s18 + $0x38] sm:$0xff] }
  0x20   : > { %1467 = vmatprep.subr.bf16.mxu1 %v1466_v18  ;;  %v186_v52 = vld [vmem:[%s1733_s18 + $0x48] sm:$0xff]  ;;  %v192_v53 = vld [vmem:[%s1733_s18 + $0x78] sm:$0xff]  ;;  %v1480_v54 = vpack.c.bf16 %v356_v48, %v355_v47  ;;  %v1482_v56 = vpack.c.bf16 %v374_v50, %v373_v49  ;;  %v357_v57 = vld [vmem:[%s2122_s1 + $0x220] sm:$0xff] }
  0x21   : > { %v194_v55 = vld [vmem:[%s1733_s18 + $0x88] sm:$0xff]  ;;  %v375_v59 = vld [vmem:[%s2122_s1 + $0x2b0] sm:$0xff]  ;;  %v376_v60 = vld [vmem:[%s2122_s1 + $0x2b8] sm:$0xff] }
  0x22   : > { %1437 = vmatpush3.bf16.msra.mxu0 %v1436_v24  ;;  %v358_v58 = vld [vmem:[%s2122_s1 + $0x228] sm:$0xff]  ;;  %v191_v61 = vld [vmem:[%s1733_s18 + $0x70] sm:$0xff]  ;;  %v193_v62 = vld [vmem:[%s1733_s18 + $0x80] sm:$0xff]  ;;  %v1486_v2 = vpack.c.bf16 %v376_v60, %v375_v59 }
  0x23   : > { %1469 = vmatpush3.bf16.msra.mxu1 %v1468_v25  ;;  %1439 = vmatprep.subr.bf16.mxu0 %v1438_v26  ;;  %v199_v63 = vld [vmem:[%s1733_s18 + $0xb0] sm:$0xff]  ;;  %v1484_v0 = vpack.c.bf16 %v358_v58, %v357_v57  ;;  %v201_v1 = vld [vmem:[%s1733_s18 + $0xc0] sm:$0xff]  ;;  %v360_v4 = vld [vmem:[%s2122_s1 + $0x238] sm:$0xff] }
  0x24   : > { %1471 = vmatprep.subr.bf16.mxu1 %v1470_v30  ;;  %v359_v3 = vld [vmem:[%s2122_s1 + $0x230] sm:$0xff]  ;;  %v377_v5 = vld [vmem:[%s2122_s1 + $0x2c0] sm:$0xff]  ;;  %v378_v6 = vld [vmem:[%s2122_s1 + $0x2c8] sm:$0xff] }
  0x25   : > { %v198_v7 = vld [vmem:[%s1733_s18 + $0xa8] sm:$0xff]  ;;  %v200_v8 = vld [vmem:[%s1733_s18 + $0xb8] sm:$0xff]  ;;  %v1488_v10 = vpack.c.bf16 %v360_v4, %v359_v3  ;;  %v1490_v12 = vpack.c.bf16 %v378_v6, %v377_v5  ;;  %v361_v13 = vld [vmem:[%s2122_s1 + $0x240] sm:$0xff] }
  0x26   : > { %1441 = vmatpush3.bf16.msra.mxu0 %v1440_v34  ;;  %v206_v9 = vld [vmem:[%s1733_s18 + $0xe8] sm:$0xff]  ;;  %v208_v11 = vld [vmem:[%s1733_s18 + $0xf8] sm:$0xff]  ;;  %v379_v15 = vld [vmem:[%s2122_s1 + $0x2d0] sm:$0xff] }
  0x27   : > { %1473 = vmatpush3.bf16.msra.mxu1 %v1472_v35  ;;  %1475 = vmatprep.subr.bf16.mxu0 %v1474_v36  ;;  %v362_v14 = vld [vmem:[%s2122_s1 + $0x248] sm:$0xff]  ;;  %v380_v16 = vld [vmem:[%s2122_s1 + $0x2d8] sm:$0xff]  ;;  %v205_v17 = vld [vmem:[%s1733_s18 + $0xe0] sm:$0xff] }
  0x28   : > { %1510 = vmatprep.subr.bf16.mxu1 %v1474_v36  ;;  %v207_v18 = vld [vmem:[%s1733_s18 + $0xf0] sm:$0xff]  ;;  %v213_v19 = vld [vmem:[%s1733_s18 + $0x120] sm:$0xff]  ;;  %v1492_v20 = vpack.c.bf16 %v362_v14, %v361_v13  ;;  %v1494_v22 = vpack.c.bf16 %v380_v16, %v379_v15  ;;  %v364_v24 = vld [vmem:[%s2122_s1 + $0x258] sm:$0xff] }
  0x29   : > { %508 = vmatmul.mubr.f32.vlgmr.msra.gmra.mrb[0].mxu0 %v177_v41  ;;  %v215_v21 = vld [vmem:[%s1733_s18 + $0x130] sm:$0xff]  ;;  %v381_v25 = vld [vmem:[%s2122_s1 + $0x2e0] sm:$0xff]  ;;  %v382_v26 = vld [vmem:[%s2122_s1 + $0x2e8] sm:$0xff] }
  0x2a   : > { %653 = vmatmul.mubr.f32.vlgmr.msra.gmra.mrb[0].mxu1 %v179_v43  ;;  %1477 = vmatpush3.bf16.msra.mxu0 %v1476_v42  ;;  %v363_v23 = vld [vmem:[%s2122_s1 + $0x250] sm:$0xff]  ;;  %v212_v27 = vld [vmem:[%s1733_s18 + $0x118] sm:$0xff]  ;;  %v214_v28 = vld [vmem:[%s1733_s18 + $0x128] sm:$0xff]  ;;  %v1498_v32 = vpack.c.bf16 %v382_v26, %v381_v25 }
  0x2b   : > { %512 = vmatprep.mubr.f32.mxu0 %v185_v44  ;;  %657 = vmatprep.mubr.f32.mxu1 %v187_v45  ;;  %v220_v29 = vld [vmem:[%s1733_s18 + $0x158] sm:$0xff]  ;;  %v1496_v30 = vpack.c.bf16 %v364_v24, %v363_v23  ;;  %v222_v31 = vld [vmem:[%s1733_s18 + $0x168] sm:$0xff]  ;;  %v365_v33 = vld [vmem:[%s2122_s1 + $0x260] sm:$0xff] }
  0x2c   : > { %1518 = vmatpush3.bf16.msra.mxu1 %v1476_v42  ;;  %1479 = vmatprep.subr.bf16.mxu0 %v1478_v46  ;;  %v366_v34 = vld [vmem:[%s2122_s1 + $0x268] sm:$0xff]  ;;  %v383_v35 = vld [vmem:[%s2122_s1 + $0x2f0] sm:$0xff]  ;;  %v384_v36 = vld [vmem:[%s2122_s1 + $0x2f8] sm:$0xff] }
  0x2d   : > { %513 = vmatmul.mubr.f32.gmra.mrb[2].mxu0 %v184_v51  ;;  %1511 = vmatprep.subr.bf16.mxu1 %v1478_v46  ;;  %v219_v37 = vld [vmem:[%s1733_s18 + $0x150] sm:$0xff]  ;;  %v221_v38 = vld [vmem:[%s1733_s18 + $0x160] sm:$0xff]  ;;  %v1500_v40 = vpack.c.bf16 %v366_v34, %v365_v33  ;;  %v1502_v42 = vpack.c.bf16 %v384_v36, %v383_v35  ;;  %v368_v44 = vld [vmem:[%s2122_s1 + $0x278] sm:$0xff] }
  0x2e   : > { %658 = vmatmul.mubr.f32.gmra.mrb[2].mxu1 %v186_v52  ;;  %517 = vmatprep.mubr.f32.mxu0 %v192_v53  ;;  %v227_v39 = vld [vmem:[%s1733_s18 + $0x190] sm:$0xff]  ;;  %v229_v41 = vld [vmem:[%s1733_s18 + $0x1a0] sm:$0xff]  ;;  %v226_v45 = vld [vmem:[%s1733_s18 + $0x188] sm:$0xff] }
  0x2f   : > { %662 = vmatprep.mubr.f32.mxu1 %v194_v55  ;;  %1481 = vmatpush3.bf16.msra.mxu0 %v1480_v54  ;;  %v367_v43 = vld [vmem:[%s2122_s1 + $0x270] sm:$0xff]  ;;  %v385_v46 = vld [vmem:[%s2122_s1 + $0x300] sm:$0xff]  ;;  %v386_v47 = vld [vmem:[%s2122_s1 + $0x308] sm:$0xff] }
  0x30   : > { %1519 = vmatpush3.bf16.msra.mxu1 %v1480_v54  ;;  %1483 = vmatprep.subr.bf16.mxu0 %v1482_v56  ;;  %v228_v48 = vld [vmem:[%s1733_s18 + $0x198] sm:$0xff]  ;;  %v234_v49 = vld [vmem:[%s1733_s18 + $0x1c8] sm:$0xff]  ;;  %v1504_v50 = vpack.c.bf16 %v368_v44, %v367_v43  ;;  %v1913_v52 = vpack.c.bf16 %v386_v47, %v385_v46  ;;  %v233_v53 = vld [vmem:[%s1733_s18 + $0x1c0] sm:$0xff] }
  0x31   : > { %518 = vmatmul.mubr.f32.gmra.mrb[4].mxu0 %v191_v61  ;;  %1512 = vmatprep.subr.bf16.mxu1 %v1482_v56  ;;  %v236_v51 = vld [vmem:[%s1733_s18 + $0x1d8] sm:$0xff]  ;;  %v235_v54 = vld [vmem:[%s1733_s18 + $0x1d0] sm:$0xff]  ;;  %v241_v55 = vld [vmem:[%s1733_s18 + $0x200] sm:$0xff] }
  0x32   : > { %663 = vmatmul.mubr.f32.gmra.mrb[4].mxu1 %v193_v62  ;;  %522 = vmatprep.mubr.f32.mxu0 %v199_v63  ;;  %v243_v56 = vld [vmem:[%s1733_s18 + $0x210] sm:$0xff]  ;;  %v240_v57 = vld [vmem:[%s1733_s18 + $0x1f8] sm:$0xff]  ;;  %v242_v58 = vld [vmem:[%s1733_s18 + $0x208] sm:$0xff] }
  0x33   : > { %667 = vmatprep.mubr.f32.mxu1 %v201_v1  ;;  %1485 = vmatpush3.bf16.msra.mxu0 %v1484_v0  ;;  %v248_v59 = vld [vmem:[%s1733_s18 + $0x238] sm:$0xff]  ;;  %v250_v60 = vld [vmem:[%s1733_s18 + $0x248] sm:$0xff]  ;;  %v247_v61 = vld [vmem:[%s1733_s18 + $0x230] sm:$0xff] }
  0x34   : > { %1520 = vmatpush3.bf16.msra.mxu1 %v1484_v0  ;;  %1487 = vmatprep.subr.bf16.mxu0 %v1486_v2  ;;  %v249_v62 = vld [vmem:[%s1733_s18 + $0x240] sm:$0xff]  ;;  %v255_v63 = vld [vmem:[%s1733_s18 + $0x270] sm:$0xff]  ;;  %v254_v1 = vld [vmem:[%s1733_s18 + $0x268] sm:$0xff] }
  0x35   : > { %523 = vmatmul.mubr.f32.gmra.mrb[6].mxu0 %v198_v7  ;;  %1513 = vmatprep.subr.bf16.mxu1 %v1486_v2  ;;  %v257_v0 = vld [vmem:[%s1733_s18 + $0x280] sm:$0xff]  ;;  %v256_v2 = vld [vmem:[%s1733_s18 + $0x278] sm:$0xff]  ;;  %v262_v3 = vld [vmem:[%s1733_s18 + $0x2a8] sm:$0xff] }
  0x36   : > { %668 = vmatmul.mubr.f32.gmra.mrb[6].mxu1 %v200_v8  ;;  %527 = vmatprep.mubr.f32.mxu0 %v206_v9  ;;  %v264_v4 = vld [vmem:[%s1733_s18 + $0x2b8] sm:$0xff]  ;;  %v261_v5 = vld [vmem:[%s1733_s18 + $0x2a0] sm:$0xff]  ;;  %v263_v6 = vld [vmem:[%s1733_s18 + $0x2b0] sm:$0xff] }
  0x37   : > { %672 = vmatprep.mubr.f32.mxu1 %v208_v11  ;;  %1489 = vmatpush3.bf16.msra.mxu0 %v1488_v10  ;;  %v269_v7 = vld [vmem:[%s1733_s18 + $0x2e0] sm:$0xff]  ;;  %v271_v8 = vld [vmem:[%s1733_s18 + $0x2f0] sm:$0xff]  ;;  %v268_v9 = vld [vmem:[%s1733_s18 + $0x2d8] sm:$0xff] }
  0x38   : > { %1521 = vmatpush3.bf16.msra.mxu1 %v1488_v10  ;;  %1491 = vmatprep.subr.bf16.mxu0 %v1490_v12  ;;  %v270_v10 = vld [vmem:[%s1733_s18 + $0x2e8] sm:$0xff]  ;;  %v276_v11 = vld [vmem:[%s1733_s18 + $0x318] sm:$0xff]  ;;  %v275_v13 = vld [vmem:[%s1733_s18 + $0x310] sm:$0xff] }
  0x39   : > { %528 = vmatmul.mubr.f32.gmra.mrb[8].mxu0 %v205_v17  ;;  %1514 = vmatprep.subr.bf16.mxu1 %v1490_v12  ;;  %v278_v12 = vld [vmem:[%s1733_s18 + $0x328] sm:$0xff]  ;;  %v277_v14 = vld [vmem:[%s1733_s18 + $0x320] sm:$0xff]  ;;  %v283_v15 = vld [vmem:[%s1733_s18 + $0x350] sm:$0xff] }
  0x3a   : > { %673 = vmatmul.mubr.f32.gmra.mrb[8].mxu1 %v207_v18  ;;  %532 = vmatprep.mubr.f32.mxu0 %v213_v19  ;;  %v285_v16 = vld [vmem:[%s1733_s18 + $0x360] sm:$0xff]  ;;  %v282_v17 = vld [vmem:[%s1733_s18 + $0x348] sm:$0xff]  ;;  %v284_v18 = vld [vmem:[%s1733_s18 + $0x358] sm:$0xff] }
  0x3b   : > { %677 = vmatprep.mubr.f32.mxu1 %v215_v21  ;;  %1493 = vmatpush3.bf16.msra.mxu0 %v1492_v20  ;;  %v182_v19 = vld [vmem:[%s1733_s18 + $0x28] sm:$0xff]  ;;  %v181_v21 = vld [vmem:[%s1733_s18 + $0x20] sm:$0xff]  ;;  %v188_v25 = vld [vmem:[%s1733_s18 + $0x58] sm:$0xff] }
  0x3c   : > { %1522 = vmatpush3.bf16.msra.mxu1 %v1492_v20  ;;  %1495 = vmatprep.subr.bf16.mxu0 %v1494_v22  ;;  %v266_v20 = vld [vmem:[%s1733_s18 + $0x2c8] sm:$0xff]  ;;  %v189_v23 = vld [vmem:[%s1733_s18 + $0x60] sm:$0xff]  ;;  %v272_v26 = vld [vmem:[%s1733_s18 + $0x2f8] sm:$0xff] }
  0x3d   : > { %533 = vmatmul.mubr.f32.gmra.mrb[10].mxu0 %v212_v27  ;;  %1515 = vmatprep.subr.bf16.mxu1 %v1494_v22  ;;  %v265_v22 = vld [vmem:[%s1733_s18 + $0x2c0] sm:$0xff]  ;;  %v196_v27 = vld [vmem:[%s1733_s18 + $0x98] sm:$0xff]  ;;  %v202_v33 = vld [vmem:[%s1733_s18 + $0xc8] sm:$0xff] }
  0x3e   : > { %678 = vmatmul.mubr.f32.gmra.mrb[10].mxu1 %v214_v28  ;;  %537 = vmatprep.mubr.f32.mxu0 %v220_v29  ;;  %v273_v24 = vld [vmem:[%s1733_s18 + $0x300] sm:$0xff]  ;;  %v280_v28 = vld [vmem:[%s1733_s18 + $0x338] sm:$0xff]  ;;  %v195_v29 = vld [vmem:[%s1733_s18 + $0x90] sm:$0xff] }
  0x3f   : > { %682 = vmatprep.mubr.f32.mxu1 %v222_v31  ;;  %1497 = vmatpush3.bf16.msra.mxu0 %v1496_v30  ;;  %v203_v31 = vld [vmem:[%s1733_s18 + $0xd0] sm:$0xff]  ;;  %v286_v34 = vld [vmem:[%s1733_s18 + $0x368] sm:$0xff]  ;;  %v224_v43 = vld [vmem:[%s1733_s18 + $0x178] sm:$0xff] }
  0x40   : > { %1523 = vmatpush3.bf16.msra.mxu1 %v1496_v30  ;;  %1499 = vmatprep.subr.bf16.mxu0 %v1498_v32  ;;  %v279_v30 = vld [vmem:[%s1733_s18 + $0x330] sm:$0xff]  ;;  %v210_v35 = vld [vmem:[%s1733_s18 + $0x108] sm:$0xff] }
  0x41   : > { %538 = vmatmul.mubr.f32.gmra.mrb[12].mxu0 %v219_v37  ;;  %1516 = vmatprep.subr.bf16.mxu1 %v1498_v32  ;;  %v287_v32 = vld [vmem:[%s1733_s18 + $0x370] sm:$0xff]  ;;  %v209_v37 = vld [vmem:[%s1733_s18 + $0x100] sm:$0xff]  ;;  %v218_v46 = vld [vmem:[%s1733_s18 + $0x148] sm:$0xff] }
  0x42   : > { %683 = vmatmul.mubr.f32.gmra.mrb[12].mxu1 %v221_v38  ;;  %542 = vmatprep.mubr.f32.mxu0 %v227_v39  ;;  %v183_v36 = vld [vmem:[%s1733_s18 + $0x30] sm:$0xff]  ;;  %v190_v38 = vld [vmem:[%s1733_s18 + $0x68] sm:$0xff]  ;;  %v217_v39 = vld [vmem:[%s1733_s18 + $0x140] sm:$0xff] }
  0x43   : > { %687 = vmatprep.mubr.f32.mxu1 %v229_v41  ;;  %1501 = vmatpush3.bf16.msra.mxu0 %v1500_v40  ;;  %v216_v41 = vld [vmem:[%s1733_s18 + $0x138] sm:$0xff]  ;;  %v211_v44 = vld [vmem:[%s1733_s18 + $0x110] sm:$0xff] }
  0x44   : > { %1524 = vmatpush3.bf16.msra.mxu1 %v1500_v40  ;;  %1503 = vmatprep.subr.bf16.mxu0 %v1502_v42  ;;  %v197_v40 = vld [vmem:[%s1733_s18 + $0xa0] sm:$0xff]  ;;  %v231_v47 = vld [vmem:[%s1733_s18 + $0x1b0] sm:$0xff] }
  0x45   : > { %543 = vmatmul.mubr.f32.gmra.mrb[14].mxu0 %v226_v45  ;;  %1517 = vmatprep.subr.bf16.mxu1 %v1502_v42  ;;  %v204_v42 = vld [vmem:[%s1733_s18 + $0xd8] sm:$0xff]  ;;  %v223_v45 = vld [vmem:[%s1733_s18 + $0x170] sm:$0xff] }
  0x46   : > { %688 = vmatmul.mubr.f32.gmra.mrb[14].mxu1 %v228_v48  ;;  %547 = vmatprep.mubr.f32.mxu0 %v234_v49  ;;  %v225_v48 = vld [vmem:[%s1733_s18 + $0x180] sm:$0xff]  ;;  %v230_v49 = vld [vmem:[%s1733_s18 + $0x1a8] sm:$0xff] }
  0x47   : > { %692 = vmatprep.mubr.f32.mxu1 %v236_v51  ;;  %1505 = vmatpush3.bf16.msra.mxu0 %v1504_v50  ;;  %v238_v51 = vld [vmem:[%s1733_s18 + $0x1e8] sm:$0xff] }
  0x48   : > { %1525 = vmatpush3.bf16.msra.mxu1 %v1504_v50  ;;  %v232_v50 = vld [vmem:[%s1733_s18 + $0x1b8] sm:$0xff] }
  0x49   : > { %548 = vmatmul.mubr.f32.gmra.mrb[16].mxu0 %v233_v53  ;;  %1507 = vmatprep.subr.bf16.mxu1 %v1913_v52  ;;  %v237_v53 = vld [vmem:[%s1733_s18 + $0x1e0] sm:$0xff] }
  0x4a   : > { %693 = vmatmul.mubr.f32.gmra.mrb[16].mxu1 %v235_v54  ;;  %552 = vmatprep.mubr.f32.mxu0 %v241_v55  ;;  %v246_v54 = vld [vmem:[%s1733_s18 + $0x228] sm:$0xff]  ;;  %v245_v55 = vld [vmem:[%s1733_s18 + $0x220] sm:$0xff] }
  0x4b   : > { %697 = vmatprep.mubr.f32.mxu1 %v243_v56  ;;  %v253_v56 = vld [vmem:[%s1733_s18 + $0x260] sm:$0xff] }
  0x4d   : > { %553 = vmatmul.mubr.f32.gmra.mrb[18].mxu0 %v240_v57  ;;  %v244_v57 = vld [vmem:[%s1733_s18 + $0x218] sm:$0xff] }
  0x4e   : > { %698 = vmatmul.mubr.f32.gmra.mrb[18].mxu1 %v242_v58  ;;  %557 = vmatprep.mubr.f32.mxu0 %v248_v59  ;;  %v260_v58 = vld [vmem:[%s1733_s18 + $0x298] sm:$0xff] }
  0x4f   : > { %702 = vmatprep.mubr.f32.mxu1 %v250_v60  ;;  %v252_v59 = vld [vmem:[%s1733_s18 + $0x258] sm:$0xff]  ;;  %v267_v60 = vld [vmem:[%s1733_s18 + $0x2d0] sm:$0xff] }
  0x51   : > { %558 = vmatmul.mubr.f32.gmra.mrb[20].mxu0 %v247_v61  ;;  %v251_v61 = vld [vmem:[%s1733_s18 + $0x250] sm:$0xff] }
  0x52   : > { %703 = vmatmul.mubr.f32.gmra.mrb[20].mxu1 %v249_v62  ;;  %562 = vmatprep.mubr.f32.mxu0 %v255_v63  ;;  %v274_v62 = vld [vmem:[%s1733_s18 + $0x308] sm:$0xff]  ;;  %v259_v63 = vld [vmem:[%s1733_s18 + $0x290] sm:$0xff] }
  0x53   : > { %707 = vmatprep.mubr.f32.mxu1 %v257_v0  ;;  %v281_v0 = vld [vmem:[%s1733_s18 + $0x340] sm:$0xff] }
  0x55   : > { %563 = vmatmul.mubr.f32.gmra.mrb[22].mxu0 %v254_v1  ;;  %v258_v1 = vld [vmem:[%s1733_s18 + $0x288] sm:$0xff] }
  0x56   : > { %708 = vmatmul.mubr.f32.gmra.mrb[22].mxu1 %v256_v2  ;;  %567 = vmatprep.mubr.f32.mxu0 %v262_v3  ;;  %v288_v2 = vld [vmem:[%s1733_s18 + $0x378] sm:$0xff] }
  0x57   : > { %712 = vmatprep.mubr.f32.mxu1 %v264_v4  ;;  %v2014_v4 = vld [vmem:[%s2123_s2] ss:$0 sm:$0xff] }
  0x59   : > { %568 = vmatmul.mubr.f32.gmra.mrb[24].mxu0 %v261_v5 }
  0x5a   : > { %713 = vmatmul.mubr.f32.gmra.mrb[24].mxu1 %v263_v6  ;;  %572 = vmatprep.mubr.f32.mxu0 %v269_v7 }
  0x5b   : > { %717 = vmatprep.mubr.f32.mxu1 %v271_v8 }
  0x5d   : > { %573 = vmatmul.mubr.f32.gmra.mrb[26].mxu0 %v268_v9 }
  0x5e   : > { %718 = vmatmul.mubr.f32.gmra.mrb[26].mxu1 %v270_v10  ;;  %577 = vmatprep.mubr.f32.mxu0 %v276_v11 }
  0x5f   : > { %722 = vmatprep.mubr.f32.mxu1 %v278_v12 }
  0x61   : > { %578 = vmatmul.mubr.f32.gmra.mrb[28].mxu0 %v275_v13 }
  0x62   : > { %723 = vmatmul.mubr.f32.gmra.mrb[28].mxu1 %v277_v14  ;;  %582 = vmatprep.mubr.f32.mxu0 %v283_v15 }
  0x63   : > { %727 = vmatprep.mubr.f32.mxu1 %v285_v16 }
  0x65   : > { %583 = vmatmul.mubr.f32.gmra.mrb[30].mxu0 %v282_v17 }
  0x66   : > { %728 = vmatmul.mubr.f32.gmra.mrb[30].mxu1 %v284_v18  ;;  %797 = vmatprep.mubr.f32.mxu0 %v182_v19 }
  0x67   : > { %857 = vmatprep.mubr.f32.mxu1 %v266_v20 }
  0x69   : > { %798 = vmatmul.mubr.f32.vlgmr.msra.gmra.mrb[32].mxu0 %v181_v21 }
  0x6a   : > { %858 = vmatmul.mubr.f32.vlgmr.msra.gmra.mrb[32].mxu1 %v265_v22  ;;  %802 = vmatprep.mubr.f32.mxu0 %v189_v23 }
  0x6b   : > { %862 = vmatprep.mubr.f32.mxu1 %v273_v24  ;;  %1509 = vmatpush3.bf16.msra.mxu1 %v1913_v52  ;;  %v239_v52 = vld [vmem:[%s1733_s18 + $0x1f0] sm:$0xff]  ;;  %s1104_s18 = sshll.u32 %s2126_s11, 3 }
  0x6c   : > { %s2070_s22 = scalar_lea.vmem %s2124_s3, %s1104_s18 }
  0x6d   : > { %803 = vmatmul.mubr.f32.gmra.mrb[34].mxu0 %v188_v25 }
  0x6e   : > { %863 = vmatmul.mubr.f32.gmra.mrb[34].mxu1 %v272_v26  ;;  %807 = vmatprep.mubr.f32.mxu0 %v196_v27 }
  0x6f   : > { %867 = vmatprep.mubr.f32.mxu1 %v280_v28 }
  0x71   : > { %808 = vmatmul.mubr.f32.gmra.mrb[36].mxu0 %v195_v29 }
  0x72   : > { %868 = vmatmul.mubr.f32.gmra.mrb[36].mxu1 %v279_v30  ;;  %812 = vmatprep.mubr.f32.mxu0 %v203_v31 }
  0x73   : > { %872 = vmatprep.mubr.f32.mxu1 %v287_v32 }
  0x75   : > { %813 = vmatmul.mubr.f32.gmra.mrb[38].mxu0 %v202_v33 }
  0x76   : > { %873 = vmatmul.mubr.f32.gmra.mrb[38].mxu1 %v286_v34  ;;  %817 = vmatprep.mubr.f32.mxu0 %v210_v35 }
  0x77   : > { %1386 = vmatprep.mubr.msk.f32.mxu1 %vm394_vm0, %v183_v36 }
  0x79   : > { %818 = vmatmul.mubr.f32.gmra.mrb[40].mxu0 %v209_v37 }
  0x7a   : > { %1387 = vmatmul.mubr.msk.f32.vlgmr.msra.gmra.mrb[40].mxu1 %vm394_vm0, %v190_v38  ;;  %822 = vmatprep.mubr.f32.mxu0 %v217_v39 }
  0x7b   : > { %1389 = vmatprep.mubr.msk.f32.mxu1 %vm394_vm0, %v197_v40 }
  0x7d   : > { %823 = vmatmul.mubr.f32.gmra.mrb[42].mxu0 %v216_v41 }
  0x7e   : > { %1390 = vmatmul.mubr.msk.f32.gmra.mrb[42].mxu1 %vm394_vm0, %v204_v42  ;;  %827 = vmatprep.mubr.f32.mxu0 %v224_v43 }
  0x7f   : > { %1392 = vmatprep.mubr.msk.f32.mxu1 %vm394_vm0, %v211_v44 }
  0x81   : > { %828 = vmatmul.mubr.f32.gmra.mrb[44].mxu0 %v223_v45 }
  0x82   : > { %1393 = vmatmul.mubr.msk.f32.gmra.mrb[44].mxu1 %vm394_vm0, %v218_v46  ;;  %832 = vmatprep.mubr.f32.mxu0 %v231_v47 }
  0x83   : > { %1395 = vmatprep.mubr.msk.f32.mxu1 %vm394_vm0, %v225_v48 }
  0x85   : > { %833 = vmatmul.mubr.f32.gmra.mrb[46].mxu0 %v230_v49 }
  0x86   : > { %1396 = vmatmul.mubr.msk.f32.gmra.mrb[46].mxu1 %vm394_vm0, %v232_v50  ;;  %837 = vmatprep.mubr.f32.mxu0 %v238_v51 }
  0x87   : > { %1398 = vmatprep.mubr.msk.f32.mxu1 %vm394_vm0, %v239_v52 }
  0x89   : > { %838 = vmatmul.mubr.f32.gmra.mrb[48].mxu0 %v237_v53 }
  0x8a   : > { %1399 = vmatmul.mubr.msk.f32.gmra.mrb[48].mxu1 %vm394_vm0, %v246_v54  ;;  %842 = vmatprep.mubr.f32.mxu0 %v245_v55 }
  0x8b   : > { %1401 = vmatprep.mubr.msk.f32.mxu1 %vm394_vm0, %v253_v56 }
  0x8d   : > { %843 = vmatmul.mubr.f32.gmra.mrb[50].mxu0 %v244_v57 }
  0x8e   : > { %1402 = vmatmul.mubr.msk.f32.gmra.mrb[50].mxu1 %vm394_vm0, %v260_v58  ;;  %847 = vmatprep.mubr.f32.mxu0 %v252_v59 }
  0x8f   : > { %1404 = vmatprep.mubr.msk.f32.mxu1 %vm394_vm0, %v267_v60 }
  0x91   : > { %848 = vmatmul.mubr.f32.gmra.mrb[52].mxu0 %v251_v61 }
  0x92   : > { %1405 = vmatmul.mubr.msk.f32.gmra.mrb[52].mxu1 %vm394_vm0, %v274_v62  ;;  %852 = vmatprep.mubr.f32.mxu0 %v259_v63 }
  0x93   : > { %1407 = vmatprep.mubr.msk.f32.mxu1 %vm394_vm0, %v281_v0 }
  0x95   : > { %853 = vmatmul.mubr.f32.gmra.mrb[54].mxu0 %v258_v1 }
  0x96   : > { %1408 = vmatmul.mubr.msk.f32.gmra.mrb[54].mxu1 %vm394_vm0, %v288_v2 }
  0xfc   : > { %v1156_v3 = vpop.f32.mrb[0].mxu0 }
  0xfd   : > { %v1157_v5 = vpop.f32.mrb[1].mxu0  ;;  %v1236_v6 = vpop.f32.mrb[0].mxu1 }
  0xfe   : > { %v1158_v7 = vadd.f32 %v1157_v5, %v1156_v3  ;;  %v1237_v8 = vpop.f32.mrb[1].mxu1 }
  0xff   : > { %v1238_v9 = vadd.f32 %v1237_v8, %v1236_v6 }
 0x100   : > { %v510_v10 = vadd.f32 %v1158_v7, %v2014_v4  ;;  %v1159_v11 = vpop.f32.mrb[2].mxu0 }
 0x101   : > { %v1160_v12 = vpop.f32.mrb[3].mxu0  ;;  %v1239_v13 = vpop.f32.mrb[2].mxu1 }
 0x102   : > { %v2017_v14 = vadd.f32 %v1238_v9, %v510_v10  ;;  %v1161_v15 = vadd.f32 %v1160_v12, %v1159_v11  ;;  %v1240_v16 = vpop.f32.mrb[3].mxu1 }
 0x103   : > { %v1241_v17 = vadd.f32 %v1240_v16, %v1239_v13 }
 0x104   : > { %v515_v18 = vadd.f32 %v1161_v15, %v2014_v4  ;;  %v1162_v19 = vpop.f32.mrb[4].mxu0 }
 0x105   : > { %v1163_v20 = vpop.f32.mrb[5].mxu0  ;;  %v1242_v21 = vpop.f32.mrb[4].mxu1 }
 0x106   : > { %v2020_v22 = vadd.f32 %v1241_v17, %v515_v18  ;;  %v1164_v23 = vadd.f32 %v1163_v20, %v1162_v19  ;;  %v1243_v24 = vpop.f32.mrb[5].mxu1 }
 0x107   : > { %v1244_v25 = vadd.f32 %v1243_v24, %v1242_v21 }
 0x108   : > { %v520_v26 = vadd.f32 %v1164_v23, %v2014_v4  ;;  %v1165_v27 = vpop.f32.mrb[6].mxu0 }
 0x109   : > { %v1166_v28 = vpop.f32.mrb[7].mxu0  ;;  %v1245_v29 = vpop.f32.mrb[6].mxu1 }
 0x10a   : > { %v2023_v30 = vadd.f32 %v1244_v25, %v520_v26  ;;  %v1167_v31 = vadd.f32 %v1166_v28, %v1165_v27  ;;  %v1246_v32 = vpop.f32.mrb[7].mxu1 }
 0x10b   : > { %v1247_v33 = vadd.f32 %v1246_v32, %v1245_v29 }
 0x10c   : > { %v525_v34 = vadd.f32 %v1167_v31, %v2014_v4  ;;  %v1168_v35 = vpop.f32.mrb[8].mxu0 }
 0x10d   : > { %v1169_v36 = vpop.f32.mrb[9].mxu0  ;;  %v1248_v37 = vpop.f32.mrb[8].mxu1 }
 0x10e   : > { %v2026_v38 = vadd.f32 %v1247_v33, %v525_v34  ;;  %v1170_v39 = vadd.f32 %v1169_v36, %v1168_v35  ;;  %v1249_v40 = vpop.f32.mrb[9].mxu1 }
 0x10f   : > { %v1250_v41 = vadd.f32 %v1249_v40, %v1248_v37 }
 0x110   : > { %v530_v42 = vadd.f32 %v1170_v39, %v2014_v4  ;;  %v1171_v43 = vpop.f32.mrb[10].mxu0 }
 0x111   : > { %v1172_v44 = vpop.f32.mrb[11].mxu0  ;;  %v1251_v45 = vpop.f32.mrb[10].mxu1 }
 0x112   : > { %v2029_v46 = vadd.f32 %v1250_v41, %v530_v42  ;;  %v1173_v47 = vadd.f32 %v1172_v44, %v1171_v43  ;;  %v1252_v48 = vpop.f32.mrb[11].mxu1 }
 0x113   : > { %v1253_v49 = vadd.f32 %v1252_v48, %v1251_v45 }
 0x114   : > { %v535_v50 = vadd.f32 %v1173_v47, %v2014_v4  ;;  %v1174_v51 = vpop.f32.mrb[12].mxu0 }
 0x115   : > { %v1175_v52 = vpop.f32.mrb[13].mxu0  ;;  %v1254_v53 = vpop.f32.mrb[12].mxu1 }
 0x116   : > { %v2032_v54 = vadd.f32 %v1253_v49, %v535_v50  ;;  %v1176_v55 = vadd.f32 %v1175_v52, %v1174_v51  ;;  %v1255_v56 = vpop.f32.mrb[13].mxu1 }
 0x117   : > { %v1256_v57 = vadd.f32 %v1255_v56, %v1254_v53 }
 0x118   : > { %v540_v58 = vadd.f32 %v1176_v55, %v2014_v4  ;;  %v1177_v59 = vpop.f32.mrb[14].mxu0 }
 0x119   : > { %v1178_v60 = vpop.f32.mrb[15].mxu0  ;;  %v1257_v61 = vpop.f32.mrb[14].mxu1 }
 0x11a   : > { %v2035_v62 = vadd.f32 %v1256_v57, %v540_v58  ;;  %v1179_v63 = vadd.f32 %v1178_v60, %v1177_v59  ;;  %v1258_v0 = vpop.f32.mrb[15].mxu1 }
 0x11b   : > { %v1259_v1 = vadd.f32 %v1258_v0, %v1257_v61 }
 0x11c   : > { %v545_v2 = vadd.f32 %v1179_v63, %v2014_v4  ;;  %v1180_v3 = vpop.f32.mrb[16].mxu0 }
 0x11d   : > { %v1181_v5 = vpop.f32.mrb[17].mxu0  ;;  %v1260_v6 = vpop.f32.mrb[16].mxu1 }
 0x11e   : > { %v2038_v7 = vadd.f32 %v1259_v1, %v545_v2  ;;  %v1182_v8 = vadd.f32 %v1181_v5, %v1180_v3  ;;  %v1261_v9 = vpop.f32.mrb[17].mxu1 }
 0x11f   : > { %v1262_v10 = vadd.f32 %v1261_v9, %v1260_v6 }
 0x120   : > { %v550_v11 = vadd.f32 %v1182_v8, %v2014_v4  ;;  %v1183_v12 = vpop.f32.mrb[18].mxu0 }
 0x121   : > { %v1184_v13 = vpop.f32.mrb[19].mxu0  ;;  %v1263_v15 = vpop.f32.mrb[18].mxu1 }
 0x122   : > { %v2041_v16 = vadd.f32 %v1262_v10, %v550_v11  ;;  %v1185_v17 = vadd.f32 %v1184_v13, %v1183_v12  ;;  %v1264_v18 = vpop.f32.mrb[19].mxu1 }
 0x123   : > { %v1265_v19 = vadd.f32 %v1264_v18, %v1263_v15 }
 0x124   : > { %v555_v20 = vadd.f32 %v1185_v17, %v2014_v4  ;;  %v1186_v21 = vpop.f32.mrb[20].mxu0 }
 0x125   : > { %v1187_v23 = vpop.f32.mrb[21].mxu0  ;;  %v1266_v24 = vpop.f32.mrb[20].mxu1 }
 0x126   : > { %v2044_v25 = vadd.f32 %v1265_v19, %v555_v20  ;;  %v1188_v26 = vadd.f32 %v1187_v23, %v1186_v21  ;;  %v1267_v27 = vpop.f32.mrb[21].mxu1 }
 0x127   : > { %v1268_v28 = vadd.f32 %v1267_v27, %v1266_v24 }
 0x128   : > { %v560_v29 = vadd.f32 %v1188_v26, %v2014_v4  ;;  %v1189_v31 = vpop.f32.mrb[22].mxu0 }
 0x129   : > { %v1190_v32 = vpop.f32.mrb[23].mxu0  ;;  %v1269_v33 = vpop.f32.mrb[22].mxu1 }
 0x12a   : > { %v2047_v34 = vadd.f32 %v1268_v28, %v560_v29  ;;  %v1191_v35 = vadd.f32 %v1190_v32, %v1189_v31  ;;  %v1270_v36 = vpop.f32.mrb[23].mxu1 }
 0x12b   : > { %v1271_v37 = vadd.f32 %v1270_v36, %v1269_v33 }
 0x12c   : > { %v565_v39 = vadd.f32 %v1191_v35, %v2014_v4  ;;  %v1192_v40 = vpop.f32.mrb[24].mxu0 }
 0x12d   : > { %v1193_v41 = vpop.f32.mrb[25].mxu0  ;;  %v1272_v42 = vpop.f32.mrb[24].mxu1 }
 0x12e   : > { %v2050_v43 = vadd.f32 %v1271_v37, %v565_v39  ;;  %v1194_v44 = vadd.f32 %v1193_v41, %v1192_v40  ;;  %v1273_v45 = vpop.f32.mrb[25].mxu1 }
 0x12f   : > { %v1274_v47 = vadd.f32 %v1273_v45, %v1272_v42 }
 0x130   : > { %v570_v48 = vadd.f32 %v1194_v44, %v2014_v4  ;;  %v1195_v49 = vpop.f32.mrb[26].mxu0 }
 0x131   : > { %v1196_v50 = vpop.f32.mrb[27].mxu0  ;;  %v1275_v51 = vpop.f32.mrb[26].mxu1 }
 0x132   : > { %v715_v52 = vadd.f32 %v1274_v47, %v570_v48  ;;  %v1197_v53 = vadd.f32 %v1196_v50, %v1195_v49  ;;  %v1276_v55 = vpop.f32.mrb[27].mxu1 }
 0x133   : > { %v1277_v56 = vadd.f32 %v1276_v55, %v1275_v51 }
 0x134   : > { %v575_v57 = vadd.f32 %v1197_v53, %v2014_v4  ;;  %v1198_v58 = vpop.f32.mrb[28].mxu0 }
 0x135   : > { %v1199_v59 = vpop.f32.mrb[29].mxu0  ;;  %v1278_v60 = vpop.f32.mrb[28].mxu1 }
 0x136   : > { %v720_v61 = vadd.f32 %v1277_v56, %v575_v57  ;;  %v1200_v63 = vadd.f32 %v1199_v59, %v1198_v58  ;;  %v1279_v0 = vpop.f32.mrb[29].mxu1 }
 0x137   : > { %v1280_v1 = vadd.f32 %v1279_v0, %v1278_v60 }
 0x138   : > { %v580_v2 = vadd.f32 %v1200_v63, %v2014_v4  ;;  %v1201_v3 = vpop.f32.mrb[30].mxu0 }
 0x139   : > { %v1202_v5 = vpop.f32.mrb[31].mxu0  ;;  %v1281_v6 = vpop.f32.mrb[30].mxu1 }
 0x13a   : > { %v725_v8 = vadd.f32 %v1280_v1, %v580_v2  ;;  %v1203_v9 = vadd.f32 %v1202_v5, %v1201_v3  ;;  %v1282_v10 = vpop.f32.mrb[31].mxu1 }
 0x13b   : > { %v1283_v11 = vadd.f32 %v1282_v10, %v1281_v6 }
 0x13c   : > { %v585_v12 = vadd.f32 %v1203_v9, %v2014_v4  ;;  %v1316_v13 = vpop.f32.mrb[32].mxu0 }
 0x13d   : > { %v1352_v15 = vpop.f32.mrb[32].mxu1  ;;  %v1317_v17 = vpop.f32.mrb[33].mxu0 }
 0x13e   : > { %v730_v18 = vadd.f32 %v1283_v11, %v585_v12  ;;  %v1318_v19 = vadd.f32 %v1317_v17, %v1316_v13  ;;  %v1353_v20 = vpop.f32.mrb[33].mxu1 }
 0x13f   : > { %v1354_v21 = vadd.f32 %v1353_v20, %v1352_v15 }
 0x140   : > { %v1319_v23 = vpop.f32.mrb[34].mxu0  ;;  %v800_v24 = vadd.f32 %v1318_v19, %v2017_v14 }
 0x141   : > { %v1355_v26 = vpop.f32.mrb[34].mxu1  ;;  %v1320_v27 = vpop.f32.mrb[35].mxu0  ;;  %v2057_v28 = vadd.f32 %v1354_v21, %v715_v52 }
 0x142   : > { %v1321_v29 = vadd.f32 %v1320_v27, %v1319_v23  ;;  %v1356_v31 = vpop.f32.mrb[35].mxu1 }
 0x143   : > { %v1357_v32 = vadd.f32 %v1356_v31, %v1355_v26 }
 0x144   : > { %v1322_v33 = vpop.f32.mrb[36].mxu0  ;;  %v805_v4 = vadd.f32 %v1321_v29, %v2020_v22 }
 0x145   : > { %v1358_v35 = vpop.f32.mrb[36].mxu1  ;;  %v1323_v36 = vpop.f32.mrb[37].mxu0  ;;  %v2060_v37 = vadd.f32 %v1357_v32, %v720_v61 }
 0x146   : > { %v1324_v39 = vadd.f32 %v1323_v36, %v1322_v33  ;;  %v1359_v40 = vpop.f32.mrb[37].mxu1 }
 0x147   : > { %v1360_v41 = vadd.f32 %v1359_v40, %v1358_v35 }
 0x148   : > { %v1325_v42 = vpop.f32.mrb[38].mxu0  ;;  %v810_v14 = vadd.f32 %v1324_v39, %v2023_v30 }
 0x149   : > { %v1361_v44 = vpop.f32.mrb[38].mxu1  ;;  %v1326_v45 = vpop.f32.mrb[39].mxu0  ;;  %v2063_v47 = vadd.f32 %v1360_v41, %v725_v8 }
 0x14a   : > { %v1327_v48 = vadd.f32 %v1326_v45, %v1325_v42  ;;  %v1362_v49 = vpop.f32.mrb[39].mxu1 }
 0x14b   : > { %v1363_v50 = vadd.f32 %v1362_v49, %v1361_v44 }
 0x14c   : > { %v1328_v51 = vpop.f32.mrb[40].mxu0  ;;  %v815_v22 = vadd.f32 %v1327_v48, %v2026_v38 }
 0x14d   : > { %v1388_v52 = vpop.f32.mrb[40].mxu1  ;;  %v1329_v30 = vpop.f32.mrb[41].mxu0  ;;  %v2072_v53 = vadd.f32 %v1363_v50, %v730_v18 }
 0x14e   : > { %v950_v55 = vadd.f32 %v1388_v52, %v805_v4  ;;  %v1330_v56 = vadd.f32 %v1329_v30, %v1328_v51  ;;  %v944_v57 = vpop.f32.mrb[41].mxu1 }
 0x14f   : > { %v945_v58 = vadd.f32 %v944_v57, %v800_v24 }
 0x150   : > { %1025 = vst.msk [vmem:[%s2070_s22 + $0x8] sm:$0xff] %vm1023_vm1, %v950_v55  ;;  %v1331_v38 = vpop.f32.mrb[42].mxu0  ;;  %v820_v59 = vadd.f32 %v1330_v56, %v2029_v46 }
 0x151   : > { %1024 = vst.msk [vmem:[%s2070_s22] sm:$0xff] %vm1023_vm1, %v945_v58  ;;  %v1391_v60 = vpop.f32.mrb[42].mxu1  ;;  %v1332_v61 = vpop.f32.mrb[43].mxu0 }
 0x152   : > { %v960_v63 = vadd.f32 %v1391_v60, %v815_v22  ;;  %v1333_v0 = vadd.f32 %v1332_v61, %v1331_v38  ;;  %v954_v1 = vpop.f32.mrb[43].mxu1 }
 0x153   : > { %v955_v2 = vadd.f32 %v954_v1, %v810_v14 }
 0x154   : > { %1027 = vst.msk [vmem:[%s2070_s22 + $0x18] sm:$0xff] %vm1023_vm1, %v960_v63  ;;  %v1334_v3 = vpop.f32.mrb[44].mxu0  ;;  %v825_v5 = vadd.f32 %v1333_v0, %v2032_v54 }
 0x155   : > { %1026 = vst.msk [vmem:[%s2070_s22 + $0x10] sm:$0xff] %vm1023_vm1, %v955_v2  ;;  %v1394_v6 = vpop.f32.mrb[44].mxu1  ;;  %v1335_v8 = vpop.f32.mrb[45].mxu0 }
 0x156   : > { %v970_v46 = vadd.f32 %v1394_v6, %v825_v5  ;;  %v1336_v9 = vadd.f32 %v1335_v8, %v1334_v3  ;;  %v964_v10 = vpop.f32.mrb[45].mxu1 }
 0x157   : > { %v965_v11 = vadd.f32 %v964_v10, %v820_v59 }
 0x158   : > { %1029 = vst.msk [vmem:[%s2070_s22 + $0x28] sm:$0xff] %vm1023_vm1, %v970_v46  ;;  %v1337_v12 = vpop.f32.mrb[46].mxu0  ;;  %v830_v13 = vadd.f32 %v1336_v9, %v2035_v62 }
 0x159   : > { %1028 = vst.msk [vmem:[%s2070_s22 + $0x20] sm:$0xff] %vm1023_vm1, %v965_v11  ;;  %v1397_v15 = vpop.f32.mrb[46].mxu1  ;;  %v1338_v17 = vpop.f32.mrb[47].mxu0 }
 0x15a   : > { %v1339_v54 = vadd.f32 %v1338_v17, %v1337_v12  ;;  %v974_v18 = vpop.f32.mrb[47].mxu1 }
 0x15b   : > { %v975_v19 = vadd.f32 %v974_v18, %v830_v13 }
 0x15c   : > { %v835_v20 = vadd.f32 %v1339_v54, %v2038_v7  ;;  %v1340_v21 = vpop.f32.mrb[48].mxu0 }
 0x15d   : > { %1030 = vst.msk [vmem:[%s2070_s22 + $0x30] sm:$0xff] %vm1023_vm1, %v975_v19  ;;  %v1341_v23 = vpop.f32.mrb[49].mxu0  ;;  %v1400_v24 = vpop.f32.mrb[48].mxu1 }
 0x15e   : > { %v980_v26 = vadd.f32 %v1397_v15, %v835_v20  ;;  %v1342_v27 = vadd.f32 %v1341_v23, %v1340_v21  ;;  %v984_v29 = vpop.f32.mrb[49].mxu1 }
 0x160   : > { %1031 = vst.msk [vmem:[%s2070_s22 + $0x38] sm:$0xff] %vm1023_vm1, %v980_v26  ;;  %v1343_v62 = vpop.f32.mrb[50].mxu0  ;;  %v840_v31 = vadd.f32 %v1342_v27, %v2041_v16 }
 0x161   : > { %v1344_v32 = vpop.f32.mrb[51].mxu0  ;;  %v1403_v33 = vpop.f32.mrb[50].mxu1 }
 0x162   : > { %v1345_v4 = vadd.f32 %v1344_v32, %v1343_v62  ;;  %v985_v7 = vadd.f32 %v984_v29, %v840_v31  ;;  %v994_v35 = vpop.f32.mrb[51].mxu1 }
 0x164   : > { %v845_v36 = vadd.f32 %v1345_v4, %v2044_v25  ;;  %1032 = vst.msk [vmem:[%s2070_s22 + $0x40] sm:$0xff] %vm1023_vm1, %v985_v7  ;;  %v1346_v39 = vpop.f32.mrb[52].mxu0 }
 0x165   : > { %v1406_v40 = vpop.f32.mrb[52].mxu1  ;;  %v1347_v41 = vpop.f32.mrb[53].mxu0 }
 0x166   : > { %v990_v42 = vadd.f32 %v1400_v24, %v845_v36  ;;  %v1010_v14 = vadd.f32 %v1406_v40, %v2060_v37  ;;  %v1348_v16 = vadd.f32 %v1347_v41, %v1346_v39  ;;  %v1004_v44 = vpop.f32.mrb[53].mxu1 }
 0x167   : > { %v1005_v45 = vadd.f32 %v1004_v44, %v2057_v28 }
 0x168   : > { %1033 = vst.msk [vmem:[%s2070_s22 + $0x48] sm:$0xff] %vm1023_vm1, %v990_v42  ;;  %1037 = vst.msk [vmem:[%s2070_s22 + $0x68] sm:$0xff] %vm1023_vm1, %v1010_v14  ;;  %v850_v25 = vadd.f32 %v1348_v16, %v2047_v34  ;;  %v1349_v48 = vpop.f32.mrb[54].mxu0 }
 0x169   : > { %1036 = vst.msk [vmem:[%s2070_s22 + $0x60] sm:$0xff] %vm1023_vm1, %v1005_v45  ;;  %v1409_v49 = vpop.f32.mrb[54].mxu1  ;;  %v1350_v50 = vpop.f32.mrb[55].mxu0 }
 0x16a   : > { %v995_v37 = vadd.f32 %v994_v35, %v850_v25  ;;  %v1020_v51 = vadd.f32 %v1409_v49, %v2072_v53  ;;  %v1351_v22 = vadd.f32 %v1350_v50, %v1349_v48  ;;  %v1014_v52 = vpop.f32.mrb[55].mxu1 }
 0x16b   : > { %v1015_v28 = vadd.f32 %v1014_v52, %v2063_v47 }
 0x16c   : > { %1034 = vst.msk [vmem:[%s2070_s22 + $0x50] sm:$0xff] %vm1023_vm1, %v995_v37  ;;  %1039 = vst.msk [vmem:[%s2070_s22 + $0x78] sm:$0xff] %vm1023_vm1, %v1020_v51  ;;  %v855_v30 = vadd.f32 %v1351_v22, %v2050_v43 }
 0x16d   : > { %1038 = vst.msk [vmem:[%s2070_s22 + $0x70] sm:$0xff] %vm1023_vm1, %v1015_v28 }
 0x16e   : > { %v1000_v34 = vadd.f32 %v1403_v33, %v855_v30 }
 0x170   : > { %1035 = vst.msk [vmem:[%s2070_s22 + $0x58] sm:$0xff] %vm1023_vm1, %v1000_v34 }
 0x171 PF: > { %s13_s12 = sadd.s32 1, %s1541_s12  }
 0x172   : > { %p10_p4 = scmp.ge.s32.totalorder %s13_s12, 4  }
 0x174   :  { %12 = sbr.rel (!%p10_p4) target bundleno = 1 (0x1), region = 62 }

</bundles_post_ra>
